<compile_context>
chip_gen: v5e
topology: v5e:2x2
jax: 0.10.0
libtpu: 0.0.40
codegen_flags: <defaults>
</compile_context>

<pallas_src>
import jax
import jax.numpy as jnp
from jax.experimental import pallas as pl
from jax.experimental.pallas import tpu as pltpu


def _flatten_copy_kernel(x_ref, o_ref):
    # Lane/sublane-dense VMEM tile copy (the .contiguous() materialization).
    o_ref[...] = x_ref[...]


def _pick_block(dim, unit, cap):
    """Largest multiple of `unit` that divides `dim` and is <= cap.

    If `dim` is not a multiple of `unit`, return `dim` itself (full extent),
    which is always a legal block size for that axis.
    """
    if dim % unit != 0:
        return dim
    b = min(cap, dim)
    b -= b % unit
    while b >= unit:
        if dim % b == 0:
            return b
        b -= unit
    return unit


@jax.jit
def flatten(x):
    """Equivalent of torch Flatten: (N, ...) -> (N, prod(...))."""
    n = x.shape[0]
    d = 1
    for s in x.shape[1:]:
        d *= s

    # Layout glue: row-major collapse of the trailing dims (identical element
    # order to torch's .contiguous().view on an NCHW tensor).  Zero-cost.
    x2d = jnp.reshape(x, (n, d))

    itemsize = jnp.dtype(x.dtype).itemsize
    # Sublane packing factor: 8 for 32-bit, 16 for bf16, 32 for int8/fp8.
    sublane_unit = max(1, 4 // itemsize) * 8
    lane_unit = 128

    # Lane-dense / sublane-dense 2-D tiles; caps keep the double-buffered
    # footprint (2 in + 2 out buffers) at <= 8 MiB for f32, safe on all of
    # v5e (16 MiB default scoped VMEM), v6e and v7x (64 MiB physical VMEM).
    block_rows = _pick_block(n, sublane_unit, 512)
    block_cols = _pick_block(d, lane_unit, 1024)

    grid = (n // block_rows, d // block_cols)

    resident_bytes = 4 * block_rows * block_cols * itemsize
    cp_kwargs = dict(dimension_semantics=("parallel", "parallel"))
    if resident_bytes > (16 << 20):
        # Only needed for very large fallback blocks (e.g. ragged huge dims).
        cp_kwargs["vmem_limit_bytes"] = min(resident_bytes + (8 << 20), 100 << 20)

    return pl.pallas_call(
        _flatten_copy_kernel,
        out_shape=jax.ShapeDtypeStruct((n, d), x.dtype),
        grid_spec=pltpu.PrefetchScalarGridSpec(
            num_scalar_prefetch=0,
            grid=grid,
            in_specs=[
                pl.BlockSpec((block_rows, block_cols), lambda i, j: (i, j))
            ],
            out_specs=pl.BlockSpec(
                (block_rows, block_cols), lambda i, j: (i, j)
            ),
        ),
        # Donate the (already correctly flattened) input buffer to the output:
        # the "copy" becomes in-place, removing the extra HBM allocation.
        input_output_aliases={0: 0},
        compiler_params=pltpu.CompilerParams(**cp_kwargs),
    )(x2d)


if __name__ == "__main__":
    key = jax.random.PRNGKey(0)
    # Small NCHW input consistent with the module's usage: batch=2, C=4, H=W=16.
    x = jax.random.normal(key, (2, 4, 16, 16), dtype=jnp.float32)

    out = flatten(x)
    out = jax.block_until_ready(out)

    # Reference: plain row-major reshape (what torch .contiguous().view does).
    ref = jnp.reshape(x, (x.shape[0], -1))
    assert out.shape == (2, 4 * 16 * 16), out.shape
    assert out.dtype == x.dtype
    assert bool(jnp.array_equal(out, ref))

    print("KERNEL_OK")
</pallas_src>

<mosaic_0001>
module attributes {stable_mosaic.version = 11 : i64} {
  func.func @_flatten_copy_kernel(%arg0: i32, %arg1: i32, %arg2: memref<2x1024xf32, #tpu.memory_space<vmem>>, %arg3: memref<2x1024xf32, #tpu.memory_space<vmem>>) attributes {dimension_semantics = [#tpu.dimension_semantics<parallel>, #tpu.dimension_semantics<parallel>], iteration_bounds = array<i64: 1, 1>, scalar_prefetch = 0 : i64, scratch_operands = 0 : i64, tpu.core_type = #tpu.core_type<tc>, window_params = [{transform_indices = @transform_0, window_bounds = array<i64: 2, 1024>}, {transform_indices = @transform_1, window_bounds = array<i64: 2, 1024>}]} {
    %c0 = arith.constant 0 : index
    %c0_0 = arith.constant 0 : index
    %0 = vector.load %arg2[%c0, %c0_0] : memref<2x1024xf32, #tpu.memory_space<vmem>>, vector<2x1024xf32>
    %c0_1 = arith.constant 0 : index
    %c0_2 = arith.constant 0 : index
    %1 = vector.load %arg3[%c0_1, %c0_2] : memref<2x1024xf32, #tpu.memory_space<vmem>>, vector<2x1024xf32>
    tpu.vector_store %arg3[%c0_1, %c0_2], %0 {strides = array<i32>} : memref<2x1024xf32, #tpu.memory_space<vmem>>, vector<2x1024xf32>,
    return
  }
  func.func @transform_0(%arg0: i32, %arg1: i32) -> (i32, i32) {
    %c0_i32 = arith.constant 0 : i32
    return %arg0, %arg1 : i32, i32
  }
  func.func @transform_1(%arg0: i32, %arg1: i32) -> (i32, i32) {
    %c0_i32 = arith.constant 0 : i32
    return %arg0, %arg1 : i32, i32
  }
}

</mosaic_0001>

<bundles_post_ra>
// kernel: flatten.1
= control target key start
LH: loop header
LB: loop body
LE: loop exit
PB: predicated region body
PF: predicated region fallthrough
CT: control target
= control target key end

     0   :  { %6 = vsyncpa [#allocation3], 0  ;;  %s116_s0 = inlined_call_operand.hbm [shape: f32[2,1024], index: 0, kind: input, shape index: {}, may-alias: {0,1}]   ;;  %s117_s1 = inlined_call_operand.hbm [shape: f32[2,1024], index: 1, kind: output, shape index: {}, may-alias: {0,1}]  }
   0x1   :  { %7 = vsyncpa [#allocation4], 0  ;;  %s13_s8 = sshll.u32 %s116_s0, 4  ;;  %s98_s9 = smov [#allocation2]   ;;  %s14_s8 = int_to_ptr.hbm [resolvable:$true] %s13_s8 }
   0x2   :  { %s15_s10 = sshll.u32 %s98_s9, 4  ;;  %s16_s10 = int_to_ptr.vmem [resolvable:$true] %s15_s10 }
   0x3   :  { %18 = dma.hbm_to_vmem [thread:$0]  %s14_s8, 256, %s16_s10, [#allocation3]  }
   0x4   :  { %94 = dma.done.wait [#allocation3], 256  }
   0x5   :  { %95 = vsyncadd [#allocation3], 4294967040  ;;  %s99_s11 = smov [#allocation5]   ;;  %s34_s15 = sshll.u32 %s117_s1, 4  ;;  %v23_v0 = vld [vmem:[#allocation2] sm:$0xff]  ;;  %v24_v1 = vld [vmem:[#allocation2 + $0x8] sm:$0xff]  ;;  %s35_s15 = int_to_ptr.hbm [resolvable:$true] %s34_s15 }
   0x6   :  { %s32_s12 = sshll.u32 %s99_s11, 4  ;;  %25 = vst [vmem:[#allocation5] sm:$0xff] %v23_v0  ;;  %s33_s12 = int_to_ptr.vmem [resolvable:$true] %s32_s12 }
   0x7   :  { %26 = vst [vmem:[#allocation5 + $0x8] sm:$0xff] %v24_v1 }
   0x8   :  { %37 = dma.vmem_to_hbm [thread:$0]  %s33_s12, 256, %s35_s15, [#allocation4]  }
   0x9   :  { %96 = dma.done.wait [#allocation4], 256  }
   0xa   :  { %97 = vsyncadd [#allocation4], 4294967040 }
   0xb   :  { %42 = vsyncpa [#allocation3], 1 }
   0xc   :  { %43 = vsyncpa [#allocation4], 1 }

</bundles_post_ra>
